<compile_context>
chip_gen: v6e
topology: v6e:2x2x1
jax: 0.10.0
libtpu: 0.0.40
codegen_flags: <defaults>
</compile_context>

<pallas_src>
import functools

import jax
import jax.numpy as jnp
from jax import lax
from jax.experimental import pallas as pl
from jax.experimental.pallas import tpu as pltpu


def _patch_sim_loss_kernel(s_ref, t_ref, o_ref, *, inv_temp, b_total, mxu_dtype):
    bt = s_ref.shape[0]  # static sub-batch size of this block

    # (Bt, N, D) sub-batch tiles, promoted to f32 for the reductions.
    s = s_ref[...].astype(jnp.float32)
    t = t_ref[...].astype(jnp.float32)

    # F.normalize(dim=-1): x / max(||x||, 1e-12) == x * rsqrt(max(||x||^2, 1e-24)).
    eps2 = jnp.float32(1e-24)
    s = s * lax.rsqrt(jnp.maximum(jnp.sum(s * s, axis=-1, keepdims=True), eps2))
    t = t * lax.rsqrt(jnp.maximum(jnp.sum(t * t, axis=-1, keepdims=True), eps2))

    # (Bt, N, N) cosine-similarity logits on the MXU: batched contraction over D,
    # no explicit transpose.  MXU inputs in mxu_dtype (bf16 by default -> native MXU
    # rate; f32 matmul is multi-pass on every generation) with f32 accumulation.
    sm = s.astype(mxu_dtype)
    tm = t.astype(mxu_dtype)
    dn = (((2,), (2,)), ((0,), (0,)))
    inv_t = jnp.float32(inv_temp)
    sim_s = lax.dot_general(sm, sm, dn, preferred_element_type=jnp.float32) * inv_t
    sim_t = lax.dot_general(tm, tm, dn, preferred_element_type=jnp.float32) * inv_t

    # Constant shift: the diagonal cosine is 1, so every row max equals inv_temp.
    # (With bf16-cast features the diagonal is 1 +/- ~1e-3, so the exp argument can be
    # marginally positive -- harmless for range; do NOT reintroduce the row max.)
    s_exp = jnp.exp(sim_s - inv_t)
    t_exp = jnp.exp(sim_t - inv_t)
    s_sum = jnp.sum(s_exp, axis=-1, keepdims=True)  # (Bt, N, 1)
    t_sum = jnp.sum(t_exp, axis=-1, keepdims=True)
    p_t = t_exp * pl.reciprocal(t_sum, approx=False)  # EUP reciprocal, not a divide

    # Fused KL(teacher || student): per row (sum_j p_t == 1; p_t > 0 always, so
    # PyTorch's 0-target convention in kl_div never triggers):
    #   sum_j p_t*(log p_t - log p_s) = sum_j p_t*(sim_t - sim_s) + log s_sum - log t_sum
    row_kl = jnp.sum(p_t * (sim_t - sim_s), axis=-1, keepdims=True) + (
        jnp.log(s_sum) - jnp.log(t_sum)
    )  # (Bt, N, 1)

    kl = jnp.sum(row_kl)

    # Non-divisible batch: the last grid step's block reads past the array and those
    # rows hold unspecified data; sum only the valid leading rows there.  The check is
    # a trace-time constant, so this is a static no-op whenever Bt divides B.
    if b_total % bt != 0:
        r = b_total % bt
        kl_tail = jnp.sum(row_kl[:r])
        is_last = pl.program_id(0) == pl.num_programs(0) - 1
        kl = jnp.where(is_last, kl_tail, kl)

    # One partial sum per grid step (distinct output block -> "parallel" batch axis).
    # TODO(synk): a (1,)-blocked SMEM scalar output would drop this 4 KiB/step VMEM
    # writeback, but blocked SMEM outputs are not reliably lowered by Mosaic; the
    # writeback here is fully hidden behind the much larger input DMAs.
    o_ref[...] = jnp.full(o_ref.shape, kl, dtype=jnp.float32)


def patch_sim_loss(student_patch_feat, teacher_patch_feat, temperature=0.1,
                   *, mxu_dtype=jnp.bfloat16):
    """student/teacher: (B, N, D). Returns scalar f32 loss (KL, reduction='batchmean')."""
    B, N, D = student_patch_feat.shape
    assert teacher_patch_feat.shape == (B, N, D)

    # Generation-aware VMEM budgets (v5e/v6e: 128 MiB physical, v7x: 64 MiB per TC).
    try:
        vmem_cap = int(pltpu.get_tpu_info().vmem_capacity_bytes)
    except Exception:
        vmem_cap = 64 * 1024 * 1024  # conservative fallback, safe on every generation
    vmem_limit = max(min(vmem_cap * 3 // 4, vmem_cap - (8 << 20)), 32 << 20)
    bt_budget = vmem_cap // 2

    # Per-batch-element working set: 2 inputs x 2 pipeline buffers of (N, D) in the
    # input dtype, 2 f32 normalized copies, 2 mxu-dtype copies, ~6 (N, N) f32 temps.
    isz = jnp.dtype(student_patch_feat.dtype).itemsize
    msz = jnp.dtype(mxu_dtype).itemsize
    bytes_per_elem = 4 * N * D * isz + 2 * N * D * 4 + 2 * N * D * msz + 6 * N * N * 4
    Bt = int(max(1, min(B, bt_budget // max(bytes_per_elem, 1))))
    if B >= 2:
        # Keep >= 2 grid steps so the "parallel" axis can split across v7x's two
        # TensorCores (costs only ~0.35us of extra step overhead on 1-TC v5e/v6e).
        Bt = min(Bt, -(-B // 2))
    G = -(-B // Bt)  # ceil div; last block may be partial (handled in-kernel)
    # TODO(synk): for very large N (>= ~1024) even Bt=1 overflows VMEM; add a
    # key-block tiling of the NxN Gram/softmax (constant-shift makes it a plain
    # running sum over key blocks, no online-max rescaling needed).

    kernel = functools.partial(
        _patch_sim_loss_kernel,
        inv_temp=float(1.0 / temperature),
        b_total=B,
        mxu_dtype=mxu_dtype,
    )

    partials = pl.pallas_call(
        kernel,
        out_shape=jax.ShapeDtypeStruct((G, 8, 128), jnp.float32),
        grid_spec=pltpu.PrefetchScalarGridSpec(
            num_scalar_prefetch=0,
            grid=(G,),
            in_specs=[
                pl.BlockSpec((Bt, N, D), lambda g: (g, 0, 0)),
                pl.BlockSpec((Bt, N, D), lambda g: (g, 0, 0)),
            ],
            out_specs=pl.BlockSpec((1, 8, 128), lambda g: (g, 0, 0)),
        ),
        compiler_params=pltpu.CompilerParams(
            dimension_semantics=("parallel",),  # distinct output block per step
            vmem_limit_bytes=int(vmem_limit),
        ),
    )(student_patch_feat, teacher_patch_feat)

    # Final reduction + 'batchmean' normalization.
    return jnp.sum(partials[:, 0, 0]) / jnp.float32(B)


def _reference_loss(s, t, temperature=0.1):
    """Pure-JAX reference mirroring the PyTorch forward."""
    s = s.astype(jnp.float32)
    t = t.astype(jnp.float32)
    eps = 1e-12
    s = s / jnp.maximum(jnp.linalg.norm(s, axis=-1, keepdims=True), eps)
    t = t / jnp.maximum(jnp.linalg.norm(t, axis=-1, keepdims=True), eps)
    sim_s = jnp.einsum("bnd,bmd->bnm", s, s) / temperature
    sim_t = jnp.einsum("bnd,bmd->bnm", t, t) / temperature
    log_p_s = jax.nn.log_softmax(sim_s, axis=-1)
    p_t = jax.nn.softmax(sim_t, axis=-1)
    log_p_t = jax.nn.log_softmax(sim_t, axis=-1)
    kl = jnp.where(p_t > 0, p_t * (log_p_t - log_p_s), 0.0)
    return jnp.sum(kl) / s.shape[0]


if __name__ == "__main__":
    key = jax.random.PRNGKey(0)
    k1, k2, k3, k4 = jax.random.split(key, 4)

    # Case 1: f32-MXU path -> tight parity with the PyTorch-equivalent reference.
    B, N, D = 2, 8, 32
    s1 = jax.random.normal(k1, (B, N, D), dtype=jnp.float32)
    t1 = jax.random.normal(k2, (B, N, D), dtype=jnp.float32)
    loss1 = jax.block_until_ready(
        patch_sim_loss(s1, t1, temperature=0.1, mxu_dtype=jnp.float32))
    ref1 = jax.block_until_ready(_reference_loss(s1, t1, temperature=0.1))
    assert jnp.allclose(loss1, ref1, rtol=1e-5, atol=1e-5), (loss1, ref1)

    # Case 2: default bf16-MXU path, D not a multiple of 128 (no wrapper padding) and
    # a batch Bt does not divide (exercises the partial-block tail handling).
    # 1/T = 10 amplifies bf16 rounding on the cosines, so the tolerance is relaxed.
    B2, N2, D2 = 3, 16, 40
    s2 = jax.random.normal(k3, (B2, N2, D2), dtype=jnp.float32)
    t2 = jax.random.normal(k4, (B2, N2, D2), dtype=jnp.float32)
    loss2 = jax.block_until_ready(patch_sim_loss(s2, t2, temperature=0.1))
    ref2 = jax.block_until_ready(_reference_loss(s2, t2, temperature=0.1))
    assert jnp.allclose(loss2, ref2, rtol=5e-2, atol=2e-3), (loss2, ref2)

    print("KERNEL_OK")
</pallas_src>

<mosaic_0001>
module attributes {stable_mosaic.version = 11 : i64} {
  func.func @_patch_sim_loss_kernel(%arg0: i32, %arg1: memref<1x8x32xf32, #tpu.memory_space<vmem>>, %arg2: memref<1x8x32xf32, #tpu.memory_space<vmem>>, %arg3: memref<1x8x128xf32, #tpu.memory_space<vmem>>) attributes {dimension_semantics = [#tpu.dimension_semantics<parallel>], iteration_bounds = array<i64: 2>, scalar_prefetch = 0 : i64, scratch_operands = 0 : i64, tpu.core_type = #tpu.core_type<tc>, window_params = [{transform_indices = @transform_0, window_bounds = array<i64: 1, 8, 32>}, {transform_indices = @transform_1, window_bounds = array<i64: 1, 8, 32>}, {transform_indices = @transform_2, window_bounds = array<i64: 1, 8, 128>}]} {
    %c0 = arith.constant 0 : index
    %c0_0 = arith.constant 0 : index
    %c0_1 = arith.constant 0 : index
    %0 = vector.load %arg1[%c0, %c0_0, %c0_1] : memref<1x8x32xf32, #tpu.memory_space<vmem>>, vector<1x8x32xf32>
    %c0_2 = arith.constant 0 : index
    %c0_3 = arith.constant 0 : index
    %c0_4 = arith.constant 0 : index
    %1 = vector.load %arg2[%c0_2, %c0_3, %c0_4] : memref<1x8x32xf32, #tpu.memory_space<vmem>>, vector<1x8x32xf32>
    %2 = arith.mulf %0, %0 : vector<1x8x32xf32>
    %cst = arith.constant dense<0.000000e+00> : vector<1x8xf32>
    %3 = vector.multi_reduction <add>, %2, %cst [2] : vector<1x8x32xf32> to vector<1x8xf32>
    %4 = vector.shape_cast %3 : vector<1x8xf32> to vector<1x8x1xf32>
    %cst_5 = arith.constant 1.000000e-24 : f32
    %5 = vector.broadcast %cst_5 : f32 to vector<1x8x1xf32>
    %6 = arith.maximumf %4, %5 : vector<1x8x1xf32>
    %7 = math.rsqrt %6 : vector<1x8x1xf32>
    %8 = vector.broadcast %7 : vector<1x8x1xf32> to vector<1x8x32xf32>
    %9 = arith.mulf %0, %8 : vector<1x8x32xf32>
    %10 = arith.mulf %1, %1 : vector<1x8x32xf32>
    %cst_6 = arith.constant dense<0.000000e+00> : vector<1x8xf32>
    %11 = vector.multi_reduction <add>, %10, %cst_6 [2] : vector<1x8x32xf32> to vector<1x8xf32>
    %12 = vector.shape_cast %11 : vector<1x8xf32> to vector<1x8x1xf32>
    %cst_7 = arith.constant 1.000000e-24 : f32
    %13 = vector.broadcast %cst_7 : f32 to vector<1x8x1xf32>
    %14 = arith.maximumf %12, %13 : vector<1x8x1xf32>
    %15 = math.rsqrt %14 : vector<1x8x1xf32>
    %16 = vector.broadcast %15 : vector<1x8x1xf32> to vector<1x8x32xf32>
    %17 = arith.mulf %1, %16 : vector<1x8x32xf32>
    %cst_8 = arith.constant dense<0.000000e+00> : vector<1x8x8xf32>
    %18 = tpu.matmul %9, %9, %cst_8 {dimension_numbers = #tpu.dot_dimension_numbers<[2], [2], [1], [1], [0, 0, 0, 1, 1, 1], [0], [0]>} : vector<1x8x32xf32>, vector<1x8x32xf32>, vector<1x8x8xf32> -> vector<1x8x8xf32>
    %cst_9 = arith.constant 1.000000e+01 : f32
    %19 = vector.broadcast %cst_9 : f32 to vector<1x8x8xf32>
    %20 = arith.mulf %18, %19 : vector<1x8x8xf32>
    %cst_10 = arith.constant dense<0.000000e+00> : vector<1x8x8xf32>
    %21 = tpu.matmul %17, %17, %cst_10 {dimension_numbers = #tpu.dot_dimension_numbers<[2], [2], [1], [1], [0, 0, 0, 1, 1, 1], [0], [0]>} : vector<1x8x32xf32>, vector<1x8x32xf32>, vector<1x8x8xf32> -> vector<1x8x8xf32>
    %cst_11 = arith.constant 1.000000e+01 : f32
    %22 = vector.broadcast %cst_11 : f32 to vector<1x8x8xf32>
    %23 = arith.mulf %21, %22 : vector<1x8x8xf32>
    %cst_12 = arith.constant 1.000000e+01 : f32
    %24 = vector.broadcast %cst_12 : f32 to vector<1x8x8xf32>
    %25 = arith.subf %20, %24 : vector<1x8x8xf32>
    %26 = math.exp %25 : vector<1x8x8xf32>
    %cst_13 = arith.constant 1.000000e+01 : f32
    %27 = vector.broadcast %cst_13 : f32 to vector<1x8x8xf32>
    %28 = arith.subf %23, %27 : vector<1x8x8xf32>
    %29 = math.exp %28 : vector<1x8x8xf32>
    %cst_14 = arith.constant dense<0.000000e+00> : vector<1x8xf32>
    %30 = vector.multi_reduction <add>, %26, %cst_14 [2] : vector<1x8x8xf32> to vector<1x8xf32>
    %31 = vector.shape_cast %30 : vector<1x8xf32> to vector<1x8x1xf32>
    %cst_15 = arith.constant dense<0.000000e+00> : vector<1x8xf32>
    %32 = vector.multi_reduction <add>, %29, %cst_15 [2] : vector<1x8x8xf32> to vector<1x8xf32>
    %33 = vector.shape_cast %32 : vector<1x8xf32> to vector<1x8x1xf32>
    %34 = tpu.reciprocal %33 : vector<1x8x1xf32> -> vector<1x8x1xf32>
    %35 = vector.broadcast %34 : vector<1x8x1xf32> to vector<1x8x8xf32>
    %36 = arith.mulf %29, %35 : vector<1x8x8xf32>
    %37 = arith.subf %23, %20 : vector<1x8x8xf32>
    %38 = arith.mulf %36, %37 : vector<1x8x8xf32>
    %cst_16 = arith.constant dense<0.000000e+00> : vector<1x8xf32>
    %39 = vector.multi_reduction <add>, %38, %cst_16 [2] : vector<1x8x8xf32> to vector<1x8xf32>
    %40 = vector.shape_cast %39 : vector<1x8xf32> to vector<1x8x1xf32>
    %41 = math.log %31 : vector<1x8x1xf32>
    %42 = math.log %33 : vector<1x8x1xf32>
    %43 = arith.subf %41, %42 : vector<1x8x1xf32>
    %44 = arith.addf %40, %43 : vector<1x8x1xf32>
    %45 = vector.shape_cast %44 : vector<1x8x1xf32> to vector<1x1x8x1xf32>
    %cst_17 = arith.constant dense<0.000000e+00> : vector<1xf32>
    %46 = vector.multi_reduction <add>, %45, %cst_17 [1, 2, 3] : vector<1x1x8x1xf32> to vector<1xf32>
    %47 = vector.shape_cast %46 : vector<1xf32> to vector<1x1x1x1xf32>
    %48 = vector.extract %47[0, 0, 0, 0] : f32 from vector<1x1x1x1xf32>
    %49 = vector.broadcast %48 : f32 to vector<1x8x128xf32>
    %c0_18 = arith.constant 0 : index
    %c0_19 = arith.constant 0 : index
    %c0_20 = arith.constant 0 : index
    %50 = vector.load %arg3[%c0_18, %c0_19, %c0_20] : memref<1x8x128xf32, #tpu.memory_space<vmem>>, vector<1x8x128xf32>
    tpu.vector_store %arg3[%c0_18, %c0_19, %c0_20], %49 {strides = array<i32>} : memref<1x8x128xf32, #tpu.memory_space<vmem>>, vector<1x8x128xf32>,
    return
  }
  func.func @transform_0(%arg0: i32) -> (i32, i32, i32) {
    %c0_i32 = arith.constant 0 : i32
    %c0_i32_0 = arith.constant 0 : i32
    %c0_i32_1 = arith.constant 0 : i32
    return %arg0, %c0_i32, %c0_i32_0 : i32, i32, i32
  }
  func.func @transform_1(%arg0: i32) -> (i32, i32, i32) {
    %c0_i32 = arith.constant 0 : i32
    %c0_i32_0 = arith.constant 0 : i32
    %c0_i32_1 = arith.constant 0 : i32
    return %arg0, %c0_i32, %c0_i32_0 : i32, i32, i32
  }
  func.func @transform_2(%arg0: i32) -> (i32, i32, i32) {
    %c0_i32 = arith.constant 0 : i32
    %c0_i32_0 = arith.constant 0 : i32
    %c0_i32_1 = arith.constant 0 : i32
    return %arg0, %c0_i32, %c0_i32_0 : i32, i32, i32
  }
}

</mosaic_0001>

<bundles_post_ra>
// kernel: tpu_custom_call.1
= control target key start
LH: loop header
LB: loop body
LE: loop exit
PB: predicated region body
PF: predicated region fallthrough
CT: control target
= control target key end

     0   :  { %7 = vsyncpa [#allocation3], 0  ;;  %s968_s0 = inlined_call_operand.hbm [shape: f32[2,8,32], index: 0, kind: input, shape index: {}]   ;;  %s969_s1 = inlined_call_operand.hbm [shape: f32[2,8,32], index: 1, kind: input, shape index: {}]   ;;  %s970_s2 = inlined_call_operand.hbm [shape: f32[2,8,128], index: 2, kind: output, shape index: {}]  }
   0x1   :  { %9 = vsyncpa [#allocation3 + $0x1], 0 }
   0x2   :  { %10 = vsyncpa [#allocation6], 0 }
   0x3   :  { %12 = vsyncpa [#allocation6 + $0x1], 0 }
   0x4   :  { %13 = vsyncpa [#allocation4], 0 }
   0x5   :  { %15 = vsyncpa [#allocation4 + $0x1], 0  ;;  %s757_s9 = smov 0   ;;  %s759_s10 = smov 0  }
   0x6   :  { %s761_s11 = smov 0   ;;  %s763_s12 = smov 0  }
   0x7 LB: > { %s778_s13 = sadd.s32 4294967295, %s735_s12   ;;  %s507_s14 = sadd.s32 4294967294, %s735_s12   ;;  %s735_s12 = sphi %s763_s12, %s989_s12   ;;  %s731_s11 = sphi %s761_s11, %s988_s11   ;;  %s727_s10 = sphi %s759_s10, %s987_s10   ;;  %s723_s9 = sphi %s757_s9, %s986_s9  }
   0x8   : > { %s782_s15 = sadd.s32 1, %s735_s12   ;;  %s28_s16 = sadd.s32 1, %s731_s11 }
   0x9   : > { %s25_s17 = ssub.s32 %s735_s12, %s782_s15  ;;  %p35_p0 = scmp.ne.s32.totalorder %s731_s11, %s727_s10 }
   0xa   : > { %p26_p1 = scmp.eq.s32.totalorder %s25_s17, 0  ;;  %p36_p2 = scmp.eq.s32.totalorder %s735_s12, 0 }
   0xb   : > { %p41_p3 = scmp.ne.s32.totalorder %s727_s10, %s723_s9  ;;  %p42_p4 = scmp.eq.s32.totalorder %s778_s13, 0 }
   0xc   : > { %s794_s18 = scalar_select %p26_p1, %s731_s11, %s28_s16  }
   0xd   : > { %p796_p5 = por %p36_p2, %p35_p0  ;;  %p800_p6 = por %p42_p4, %p41_p3 }
   0xe   : > { %p91_p7 = scmp.eq.s32.totalorder %s778_s13, 1  ;;  %p97_p8 = scmp.eq.s32.totalorder %s507_s14, 1 }
   0xf   : > { %s974_s20 = scalar_select %p800_p6, 1, 0 }
  0x10   : > { %p561_p10 = scmp.lt.s32.totalorder %s735_s12, 2  ;;  %p807_p11 = por %p91_p7, %p35_p0 }
  0x11   : > { %p811_p12 = por %p97_p8, %p41_p3  ;;  %s816_s23 = sand.u32 1, %s731_s11  }
  0x12   : > { %s975_s21 = scalar_select %p807_p11, 1, 0 }
  0x13   : > { %s976_s22 = scalar_select %p811_p12, 1, 0 }
  0x14   : > { %s511_s24 = sshll.u32 %s735_s12, 7  ;;  %s510_s25 = sshll.u32 %s816_s23, 3 }
  0x15   : > { %s825_s28 = scalar_lea.hbm %s968_s0, %s511_s24  ;;  %s121_s29 = scalar_lea.vmem [#allocation2], %s510_s25 }
  0x16   : > { %s128_s30 = sshll.u32 %s121_s29, 4  ;;  %p831_p13 = pnand %p561_p10, %p796_p5  ;;  %s835_s30 = int_to_ptr.vmem [resolvable:$true] %s128_s30 }
  0x17   : > { %s118_s4 = scalar_lea.sflag [#allocation3], %s816_s23  ;;  %s611_s5 = scalar_lea.hbm %s825_s28, 128 }
  0x18   : > { %p612_p2 = scmp.ne.s32.totalorder %s825_s28, %s611_s5  ;;  %p613_p3 = pneg %p831_p13 }
  0x19   : > { %s616_s8 = scalar_lea.hbm %s968_s0, 256  ;;  %p617_p5 = scmp.lt.s32.totalorder %s825_s28, %s968_s0 }
  0x1a   : > { %p614_p4 = pnand %p613_p3, %p612_p2  ;;  %p618_p8 = scmp.lt.s32.totalorder %s616_s8, %s611_s5 }
  0x1c   : > { %p615_p7 = pneg %p614_p4  ;;  %p619_p10 = por %p618_p8, %p617_p5 }
  0x1e   : > { %p620_p9 = pnand %p619_p10, %p615_p7 }
  0x20   : > { %623 = shalt.err (!%p620_p9)
}
  0x21   : > { %s624_s17 = scalar_lea.vmem %s835_s30, 128  ;;  %s737_s19 = smov [#allocation2]  }
  0x22   : > { %p625_p0 = scmp.ne.s32.totalorder %s835_s30, %s624_s17  ;;  %s629_s26 = sshll.u32 %s737_s19, 4  ;;  %s630_s26 = int_to_ptr.vmem [resolvable:$false] %s629_s26 }
  0x23   : > { %s631_s27 = scalar_lea.vmem %s630_s26, 256  ;;  %p632_p1 = scmp.lt.s32.totalorder %s835_s30, %s630_s26 }
  0x24   : > { %p627_p2 = pnand %p625_p0, %p613_p3  ;;  %p633_p12 = scmp.lt.s32.totalorder %s631_s27, %s624_s17 }
  0x26   : > { %p628_p4 = pneg %p627_p2  ;;  %p634_p11 = por %p633_p12, %p632_p1 }
  0x28   : > { %p635_p5 = pnand %p634_p11, %p628_p4 }
  0x2a   : > { %638 = shalt.err (!%p635_p5)
}
  0x2b   : > { %553 = dma.hbm_to_vmem [thread:$0]  (!%p831_p13), %s825_s28, 128, %s835_s30, %s118_s4  }
  0x2c   : > { %p978_p9 = scmp.lt.s32.totalorder %s735_s12, 3  ;;  %p979_p0 = scmp.ge.s32.totalorder %s735_s12, 1 }
  0x2d   : > { %s877_s7 = scalar_lea.hbm %s969_s1, %s511_s24  ;;  %s139_s8 = scalar_lea.vmem [#allocation5], %s510_s25 }
  0x2e   : > { %p868_p7 = pnand %p979_p0, %p978_p9  ;;  %s146_s14 = sshll.u32 %s139_s8, 4  ;;  %s147_s14 = int_to_ptr.vmem [resolvable:$true] %s146_s14 }
  0x2f   : > { %s136_s28 = scalar_lea.sflag [#allocation6], %s816_s23  ;;  %s639_s30 = scalar_lea.hbm %s877_s7, 128 }
  0x30   : > { %s980_s29 = scalar_select %p868_p7, 1, 0 }
  0x31   : > { %p640_p11 = scmp.ne.s32.totalorder %s877_s7, %s639_s30  ;;  %s644_s17 = scalar_lea.hbm %s969_s1, 256 }
  0x32   : > { %p645_p8 = scmp.lt.s32.totalorder %s877_s7, %s969_s1  ;;  %p646_p10 = scmp.lt.s32.totalorder %s644_s17, %s639_s30 }
  0x33   : > { %p642_p12 = pnand %p640_p11, %p613_p3 }
  0x34   : > { %p647_p2 = por %p646_p10, %p645_p8 }
  0x35   : > { %p643_p1 = pneg %p642_p12 }
  0x37   : > { %p648_p4 = pnand %p647_p2, %p643_p1 }
  0x39   : > { %651 = shalt.err (!%p648_p4)
}
  0x3a   : > { %s652_s25 = scalar_lea.vmem %s147_s14, 128  ;;  %s738_s23 = smov [#allocation5]  }
  0x3b   : > { %p653_p5 = scmp.ne.s32.totalorder %s147_s14, %s652_s25  ;;  %s657_s26 = sshll.u32 %s738_s23, 4  ;;  %s658_s26 = int_to_ptr.vmem [resolvable:$false] %s657_s26 }
  0x3c   : > { %s659_s27 = scalar_lea.vmem %s658_s26, 256  ;;  %p660_p11 = scmp.lt.s32.totalorder %s147_s14, %s658_s26 }
  0x3d   : > { %p655_p9 = pnand %p653_p5, %p613_p3  ;;  %p661_p12 = scmp.lt.s32.totalorder %s659_s27, %s652_s25 }
  0x3f   : > { %p656_p0 = pneg %p655_p9  ;;  %p662_p6 = por %p661_p12, %p660_p11 }
  0x41   : > { %p663_p7 = pnand %p662_p6, %p656_p0 }
  0x43   : > { %666 = shalt.err (!%p663_p7)
}
  0x44   : > { %556 = dma.hbm_to_vmem [thread:$0]  (!%p831_p13), %s877_s7, 128, %s147_s14, %s136_s28  }
  0x45   : > { %p981_p1 = scmp.ne.s32.totalorder %s980_s29, 0 }
  0x46   : > { %s903_s5 = sand.u32 (!%p981_p1), 1, %s727_s10   ;;  %p982_p6 = scmp.ne.s32.totalorder (!%p981_p1), %s974_s20, 0 }
  0x47   : > { %155 = sbr.rel (%p981_p1) target bundleno = 968 (0x3c8), region = 28  ;;  %s906_s6 = sshll.u32 (!%p981_p1), %s903_s5, 3 }
  0x48   : > { %s158_s8 = scalar_lea.sflag (!%p981_p1), [#allocation3], %s903_s5  ;;  %s161_s30 = scalar_lea.vmem (!%p981_p1), [#allocation2], %s906_s6 }
  0x4c   : > { %710 = dma.done.wait (%p982_p6), %s158_s8, 128  }
  0x4d   : > { %712 = vsyncadd (%p982_p6), %s158_s8, 4294967168  ;;  %s167_s3 = scalar_lea.sflag [#allocation6], %s903_s5  ;;  %s170_s29 = scalar_lea.vmem [#allocation5], %s906_s6 }
  0x4e   : > { %714 = dma.done.wait (%p982_p6), %s167_s3, 128  }
  0x4f   : > { %716 = vsyncadd (%p982_p6), %s167_s3, 4294967168  ;;  %v197_v0 = vld [vmem:[%s170_s29] sm:$0xff]  ;;  %vm199_vm0 = vcmask 261120   ;;  %v196_v1 = vld [vmem:[%s161_s30] sm:$0xff]  ;;  %v739_v6 = vmov 0.0   ;;  %vm740_vm1 = vmmov 0  }
  0x50   : > { %v206_v2 = vmul.f32 %v197_v0, %v197_v0  ;;  %v198_v3 = vmul.f32 %v196_v1, %v196_v1  ;;  %537 = vmatprep.subr.mxu1 %v739_v6  ;;  %532 = vmatprep.subr.mxu0 %v739_v6  ;;  %vm367_vm2 = vcmask 64512   ;;  %vm387_vm3 = vcmask 7168   ;;  %s195_s20 = scalar_lea.vmem [#allocation7], %s906_s6  ;;  %s525_s14 = sshll.u32 %s778_s13, 7 }
  0x51   : > { %539 = vmatprep.mubr.msk.f32.mxu1 %vm740_vm1, %v739_v6  ;;  %534 = vmatprep.mubr.msk.f32.mxu0 %vm740_vm1, %v739_v6  ;;  %s414_s7 = sshll.u32 %s195_s20, 4  ;;  %s412_s17 = scalar_lea.hbm %s970_s2, %s525_s14  ;;  %s928_s7 = int_to_ptr.vmem [resolvable:$true] %s414_s7 }
  0x52   : > { %v207_v4 = vsel %vm199_vm0, %v206_v2, 0.0  ;;  %v200_v5 = vsel %vm199_vm0, %v198_v3, 0.0  ;;  %s401_s24 = scalar_lea.sflag [#allocation4], %s903_s5  ;;  %s667_s19 = scalar_lea.vmem %s928_s7, 128 }
  0x53   : > { %208 = vadd.xlane.f32.xlu0 %v207_v4  ;;  %p668_p13 = scmp.ne.s32.totalorder %s928_s7, %s667_s19  ;;  %p983_p3 = scmp.ne.s32.totalorder %s975_s21, 0 }
  0x54   : > { %s741_s25 = smov [#allocation7]  }
  0x55   : > { %p669_p7 = pnand %p668_p13, %p983_p3  ;;  %s671_s13 = sshll.u32 %s741_s25, 4  ;;  %s672_s13 = int_to_ptr.vmem [resolvable:$false] %s671_s13 }
  0x56   : > { %s673_s23 = scalar_lea.vmem %s672_s13, 256  ;;  %p674_p10 = scmp.lt.s32.totalorder %s928_s7, %s672_s13 }
  0x57   : > { %201 = vadd.xlane.f32.xlu0 %v200_v5  ;;  %p670_p8 = pneg %p669_p7  ;;  %p675_p2 = scmp.lt.s32.totalorder %s673_s23, %s667_s19 }
  0x59   : > { %p676_p4 = por %p675_p2, %p674_p10 }
  0x5b   : > { %p677_p5 = pnand %p676_p4, %p670_p8 }
  0xdc   : > { %v209_v7 = vpop.xlane.xlu0 %208 }
  0xdd   : > { %v210_v8 = vmax.f32 %v209_v7, 1e-24 }
  0xdf   : > { %597 = vrsqrt.f32 %v210_v8 }
  0xe0   : > { %v202_v9 = vpop.xlane.xlu0 %201 }
  0xe1   : > { %v203_v10 = vmax.f32 %v202_v9, 1e-24 }
  0xe3   : > { %599 = vrsqrt.f32 %v203_v10 }
  0xec   : > { %v598_v11 = vpop.eup %597 }
  0xed   : > { %v212_v12 = vmul.f32 %v598_v11, %v197_v0 }
  0xef   : > { %538 = vmatpush3.xpose.msk.msra.mxu1 %vm199_vm0, %v212_v12 }
  0xf0   : > { %v600_v13 = vpop.eup %599 }
  0xf1   : > { %v205_v14 = vmul.f32 %v600_v13, %v196_v1 }
  0xf2   : > { %540 = vmatmul.mubr.msk.f32.vlgmr.msra.gmra.mxu1 %vm199_vm0, %v212_v12 }
  0xf3   : > { %533 = vmatpush3.xpose.msk.msra.mxu0 %vm199_vm0, %v205_v14 }
  0xf6   : > { %535 = vmatmul.mubr.msk.f32.vlgmr.msra.gmra.mxu0 %vm199_vm0, %v205_v14 }
 0x1b2   : > { %v356_v15 = vpop.f32.mrf.mxu1 }
 0x1b3   : > { %v360_v16 = vmul.f32 10.0, %v356_v15 }
 0x1b4   : > { %v541_v17 = vpop.f32.mrf.mxu1 }
 0x1b5   : > { %v523_v18 = vadd.f32 -10.0, %v360_v16 }
 0x1b6   : > { %v282_v19 = vpop.f32.mrf.mxu0 }
 0x1b7   : > { %v365_v20 = vmul.f32 1.442695, %v523_v18  ;;  %v286_v21 = vmul.f32 10.0, %v282_v19 }
 0x1b8   : > { %v536_v22 = vpop.f32.mrf.mxu0 }
 0x1b9   : > { %601 = vpow2.f32 %v365_v20  ;;  %v522_v23 = vadd.f32 -10.0, %v286_v21  ;;  %v376_v24 = vsub.f32 %v360_v16, %v286_v21 }
 0x1bb   : > { %v362_v25 = vmul.f32 1.442695, %v522_v23 }
 0x1bd   : > { %603 = vpow2.f32 %v362_v25 }
 0x1c6   : > { %v602_v26 = vpop.eup %601 }
 0x1c7   : > { %v371_v27 = vsel %vm367_vm2, %v602_v26, 0.0 }
 0x1c8   : > { %372 = vadd.xlane.f32.xlu1 %v371_v27 }
 0x1ca   : > { %v604_v28 = vpop.eup %603 }
 0x1cb   : > { %v368_v29 = vsel %vm367_vm2, %v604_v28, 0.0 }
 0x1cc   : > { %369 = vadd.xlane.f32.xlu1 %v368_v29 }
 0x251   : > { %v373_v30 = vpop.xlane.xlu1 %372 }
 0x252   : > { %605 = vrcp.f32 %v373_v30 }
 0x255   : > { %v370_v35 = vpop.xlane.xlu1 %369 }
 0x256   : > { %607 = vlog2.f32 %v370_v35 }
 0x257   : > { %609 = vlog2.f32 %v373_v30 }
 0x25f   : > { %v606_v31 = vpop.eup %605 }
 0x260   : > { %v375_v32 = vmul.f32 %v606_v31, %v602_v26 }
 0x262   : > { %v377_v33 = vmul.f32 %v376_v24, %v375_v32 }
 0x263   : > { %v608_v36 = vpop.eup %607 }
 0x264   : > { %v378_v34 = vsel %vm367_vm2, %v377_v33, 0.0  ;;  %v610_v37 = vpop.eup %609  ;;  %v382_v38 = vmul.f32 0.6931472, %v608_v36 }
 0x265   : > { %379 = vadd.xlane.f32.xlu0 %v378_v34  ;;  %v384_v39 = vmul.f32 0.6931472, %v610_v37 }
 0x267   : > { %v385_v40 = vsub.f32 %v382_v38, %v384_v39 }
 0x2ee   : > { %v380_v41 = vpop.xlane.xlu0 %379 }
 0x2ef   : > { %v386_v42 = vadd.f32 %v385_v40, %v380_v41 }
 0x2f1   : > { %v388_v43 = vsel %vm387_vm3, %v386_v42, 0.0 }
 0x2f2   : > { %389 = vadd.xlane.f32.xlu1 %v388_v43 }
 0x37b   : > { %v390_v44 = vpop.xlane.xlu1 %389 }
 0x37c   : > { %v391_v45 = vrot.slane %v390_v44, 4 }
 0x37e   : > { %v392_v46 = vadd.f32 %v391_v45, %v390_v44 }
 0x380   : > { %v393_v47 = vrot.slane %v392_v46, 2 }
 0x382   : > { %v394_v48 = vadd.f32 %v393_v47, %v392_v46 }
 0x384   : > { %v395_v49 = vrot.slane %v394_v48, 1 }
 0x386   : > { %v396_v50 = vadd.f32 %v395_v49, %v394_v48 }
 0x388   : > { %542 = vpush %v396_v50 }
 0x3b9   : > { %s543_s28 = spop %542 }
 0x3ba   : > { %v398_v51 = vstv %s543_s28 }
 0x3bb   : > { %399 = vst [vmem:[%s195_s20] sm:$0xff] %v398_v51 }
 0x3bc   : > { %680 = shalt.err (!%p677_p5)
}
 0x3bd   : > { %s681_s26 = scalar_lea.hbm %s412_s17, 128  ;;  %s685_s6 = scalar_lea.hbm %s970_s2, 256 }
 0x3be   : > { %p682_p9 = scmp.ne.s32.totalorder %s412_s17, %s681_s26  ;;  %p686_p12 = scmp.lt.s32.totalorder %s412_s17, %s970_s2 }
 0x3bf   : > { %p687_p1 = scmp.lt.s32.totalorder %s685_s6, %s681_s26 }
 0x3c0   : > { %p683_p0 = pnand %p682_p9, %p983_p3 }
 0x3c1   : > { %p688_p6 = por %p687_p1, %p686_p12 }
 0x3c2   : > { %p684_p11 = pneg %p683_p0 }
 0x3c4   : > { %p689_p13 = pnand %p688_p6, %p684_p11 }
 0x3c6   : > { %692 = shalt.err (!%p689_p13)
}
 0x3c7   : > { %548 = dma.vmem_to_hbm [thread:$0]  (%p983_p3), %s928_s7, 128, %s412_s17, %s401_s24  }
 0x3c8 PF: > { %s426_s3 = sand.u32 1, %s723_s9   ;;  %p984_p7 = scmp.ne.s32.totalorder %s976_s22, 0 }
 0x3c9   : > { %p985_p8 = scmp.ge.s32.totalorder %s735_s12, 2  ;;  %s427_s29 = scalar_lea.sflag [#allocation4], %s426_s3 }
 0x3cb   : > { %p558_p10 = pnand %p985_p8, %p984_p7 }
 0x3cd   : > { %p559_p2 = pneg %p558_p10 }
 0x3cf   : > { %718 = dma.done.wait (%p559_p2), %s427_s29, 128  }
 0x3d0   : > { %720 = vsyncadd (%p559_p2), %s427_s29, 4294967168  ;;  %p18_p4 = scmp.ge.s32.totalorder %s782_s15, 4   ;;  %s986_s9 = smov %s727_s10 }
 0x3d1   : > { %s987_s10 = smov %s731_s11  ;;  %s988_s11 = smov %s794_s18 }
 0x3d2   : > { %s989_s12 = smov %s782_s15  ;;  %20 = sbr.rel (!%p18_p4) target bundleno = 7 (0x7), region = 86 }
 0x3d7   :  { %432 = vsyncpa [#allocation3], 1 }
 0x3d8   :  { %434 = vsyncpa [#allocation3 + $0x1], 1 }
 0x3d9   :  { %435 = vsyncpa [#allocation6], 1 }
 0x3da   :  { %437 = vsyncpa [#allocation6 + $0x1], 1 }
 0x3db   :  { %438 = vsyncpa [#allocation4], 1 }
 0x3dc   :  { %440 = vsyncpa [#allocation4 + $0x1], 1 }

</bundles_post_ra>
